<compile_context>
chip_gen: v7x
topology: tpu7x:2x2x1
jax: 0.10.0
libtpu: 0.0.40
codegen_flags: <defaults>
</compile_context>

<pallas_src>
from functools import partial

import jax
import jax.numpy as jnp
from jax.experimental import pallas as pl
from jax.experimental.pallas import tpu as pltpu


def _round_up(n, m):
    return ((n + m - 1) // m) * m


def dictionary_expert_kernel(x_ref, w1_ref, b1_ref, wcat_ref, bcat_ref, out_ref):
    """Fused encoder + dictionary reconstruction for one batch tile.

    out = concat([z, recon], axis=-1) where
      h     = ReLU(x @ W1 + b1)
      z     = h @ W2 + b2
      recon = h @ (W2 @ dict.T) + b2 @ dict.T
    """
    # x arrives f32 with its real (unpadded) feature dim; cast in-kernel.
    x = x_ref[...].astype(jnp.bfloat16)
    h = jnp.dot(x, w1_ref[...], preferred_element_type=jnp.float32) + b1_ref[...]
    h = jnp.maximum(h, 0.0).astype(jnp.bfloat16)
    # Single N = C_pad + D_pad matmul (fills the 256-wide MXU on v6e/v7x) and
    # one wide lane-dense output store per step.
    out = jnp.dot(h, wcat_ref[...], preferred_element_type=jnp.float32) + bcat_ref[...]
    out_ref[...] = out.astype(out_ref.dtype)


def _pick_batch_tile(B, batch_tile):
    """Largest multiple-of-8 tile <= batch_tile; prefer one that divides B."""
    B8 = _round_up(B, 8)
    if B8 <= batch_tile:
        return B8
    cap = batch_tile - (batch_tile % 8)
    for tb in range(cap, 7, -8):
        if B8 % tb == 0:
            return tb
    return cap


@partial(jax.jit, static_argnames=("batch_tile",))
def dictionary_expert(x, w1, b1, w2, b2, dictionary, *, batch_tile=512):
    """recon, z = DictionaryExpert(x).  x: [B, input_dim] float32."""
    B, D = x.shape
    H = w1.shape[1]            # 2 * code_dim
    C = dictionary.shape[1]    # code_dim

    # Lane-dense padding only where it matters: matmul OUTPUT (N) dims.
    # x's K dim stays at its real size (MXU zero-pads K internally for free).
    H_pad = _round_up(H, 128)
    C_pad = _round_up(C, 128)
    D_pad = _round_up(D, 128)
    N_out = C_pad + D_pad

    tb = _pick_batch_tile(B, batch_tile)
    B_pad = _round_up(B, tb)

    # One-time (jitted, fused) parameter prep: fold the dictionary into the
    # second linear so recon = h @ W_rec + b_rec, then concatenate with W2.
    dict_t = dictionary.T                              # [C, D]
    w_rec = w2 @ dict_t                                # [H, D]
    b_rec = b2 @ dict_t                                # [1, D]

    def pad2(a, rows, cols):
        return jnp.pad(a, ((0, rows - a.shape[0]), (0, cols - a.shape[1])))

    w1p = pad2(w1, D, H_pad).astype(jnp.bfloat16)                       # [D, H_pad]
    b1p = pad2(b1, 1, H_pad).astype(jnp.float32)                        # [1, H_pad]
    wcat = jnp.concatenate([pad2(w2, H_pad, C_pad),
                            pad2(w_rec, H_pad, D_pad)],
                           axis=1).astype(jnp.bfloat16)                 # [H_pad, N_out]
    bcat = jnp.concatenate([pad2(b2, 1, C_pad),
                            pad2(b_rec, 1, D_pad)],
                           axis=1).astype(jnp.float32)                  # [1, N_out]

    # Pad only the batch dim of x if the tile does not divide it (cheap, fused).
    xp = x if B_pad == B else jnp.pad(x, ((0, B_pad - B), (0, 0)))

    def resident(shape):
        # Weights / biases: same block every grid step -> stay in VMEM.
        return pl.BlockSpec(shape, lambda i: (0, 0))

    out = pl.pallas_call(
        dictionary_expert_kernel,
        out_shape=jax.ShapeDtypeStruct((B_pad, N_out), jnp.float32),
        grid=(B_pad // tb,),
        in_specs=[
            pl.BlockSpec((tb, D), lambda i: (i, 0)),   # x tile (real feature dim)
            resident((D, H_pad)),                      # W1
            resident((1, H_pad)),                      # b1
            resident((H_pad, N_out)),                  # [W2 | W2 @ dict.T]
            resident((1, N_out)),                      # [b2 | b2 @ dict.T]
        ],
        out_specs=pl.BlockSpec((tb, N_out), lambda i: (i, 0)),
        compiler_params=pltpu.CompilerParams(
            dimension_semantics=("parallel",)),
    )(xp, w1p, b1p, wcat, bcat)

    # Split combined output and strip padding (fused under jit).
    z = out[:B, :C]
    recon = out[:B, C_pad:C_pad + D]
    return recon, z


def dictionary_expert_ref(x, w1, b1, w2, b2, dictionary):
    """Pure-JAX f32 reference (mirrors the PyTorch forward)."""
    h = jnp.maximum(x @ w1 + b1, 0.0)
    z = h @ w2 + b2
    recon = z @ dictionary.T
    return recon, z


def _rel_close(a, b, tol):
    denom = jnp.maximum(jnp.max(jnp.abs(b)), 1e-6)
    return bool((jnp.max(jnp.abs(a - b)) / denom) <= tol)


if __name__ == "__main__":
    # Shapes consistent with the module; batch_tile=192 -> 2 equal full tiles
    # for B=384 (no padded rows, balanced across v7x's two TensorCores).
    batch, input_dim, code_dim = 384, 32, 16
    hidden = 2 * code_dim

    key = jax.random.PRNGKey(0)
    k_x, k_dict, k_w1, k_b1, k_w2, k_b2 = jax.random.split(key, 6)

    dictionary = jax.random.normal(k_dict, (input_dim, code_dim), jnp.float32) * 0.01
    w1 = jax.random.normal(k_w1, (input_dim, hidden), jnp.float32) * 0.05
    b1 = jax.random.normal(k_b1, (1, hidden), jnp.float32) * 0.05
    w2 = jax.random.normal(k_w2, (hidden, code_dim), jnp.float32) * 0.05
    b2 = jax.random.normal(k_b2, (1, code_dim), jnp.float32) * 0.05
    x = jax.random.normal(k_x, (batch, input_dim), jnp.float32)

    recon, z = dictionary_expert(x, w1, b1, w2, b2, dictionary, batch_tile=192)
    jax.block_until_ready((recon, z))

    recon_ref, z_ref = dictionary_expert_ref(x, w1, b1, w2, b2, dictionary)
    assert recon.shape == (batch, input_dim) and z.shape == (batch, code_dim)
    # bf16 matmul operands + folded dictionary -> relaxed tolerance.
    # (recon == z @ dict.T only holds to bf16 precision because of the fold.)
    assert _rel_close(z, z_ref, 3e-2)
    assert _rel_close(recon, recon_ref, 3e-2)

    print("KERNEL_OK")
</pallas_src>

<mosaic_0001>
module attributes {stable_mosaic.version = 11 : i64} {
  func.func @dictionary_expert_kernel(%arg0: i32, %arg1: memref<192x32xf32, #tpu.memory_space<vmem>>, %arg2: memref<32x128xbf16, #tpu.memory_space<vmem>>, %arg3: memref<1x128xf32, #tpu.memory_space<vmem>>, %arg4: memref<128x256xbf16, #tpu.memory_space<vmem>>, %arg5: memref<1x256xf32, #tpu.memory_space<vmem>>, %arg6: memref<192x256xf32, #tpu.memory_space<vmem>>) attributes {dimension_semantics = [#tpu.dimension_semantics<parallel>], iteration_bounds = array<i64: 2>, scalar_prefetch = 0 : i64, scratch_operands = 0 : i64, tpu.core_type = #tpu.core_type<tc>, window_params = [{transform_indices = @transform_0, window_bounds = array<i64: 192, 32>}, {pipeline_mode = #tpu.pipeline_mode<synchronous>, transform_indices = @transform_1, window_bounds = array<i64: 32, 128>}, {pipeline_mode = #tpu.pipeline_mode<synchronous>, transform_indices = @transform_2, window_bounds = array<i64: 1, 128>}, {pipeline_mode = #tpu.pipeline_mode<synchronous>, transform_indices = @transform_3, window_bounds = array<i64: 128, 256>}, {pipeline_mode = #tpu.pipeline_mode<synchronous>, transform_indices = @transform_4, window_bounds = array<i64: 1, 256>}, {transform_indices = @transform_5, window_bounds = array<i64: 192, 256>}]} {
    %c0 = arith.constant 0 : index
    %c0_0 = arith.constant 0 : index
    %0 = vector.load %arg1[%c0, %c0_0] : memref<192x32xf32, #tpu.memory_space<vmem>>, vector<192x32xf32>
    %1 = arith.truncf %0 : vector<192x32xf32> to vector<192x32xbf16>
    %c0_1 = arith.constant 0 : index
    %c0_2 = arith.constant 0 : index
    %2 = vector.load %arg2[%c0_1, %c0_2] : memref<32x128xbf16, #tpu.memory_space<vmem>>, vector<32x128xbf16>
    %cst = arith.constant dense<0.000000e+00> : vector<192x128xf32>
    %3 = tpu.matmul %1, %2, %cst {dimension_numbers = #tpu.dot_dimension_numbers<[1], [0], [0], [1], [0, 0, 1, 1], [], []>} : vector<192x32xbf16>, vector<32x128xbf16>, vector<192x128xf32> -> vector<192x128xf32>
    %c0_3 = arith.constant 0 : index
    %c0_4 = arith.constant 0 : index
    %4 = vector.load %arg3[%c0_3, %c0_4] : memref<1x128xf32, #tpu.memory_space<vmem>>, vector<1x128xf32>
    %5 = vector.broadcast %4 : vector<1x128xf32> to vector<192x128xf32>
    %6 = arith.addf %3, %5 : vector<192x128xf32>
    %cst_5 = arith.constant 0.000000e+00 : f32
    %7 = vector.broadcast %cst_5 : f32 to vector<192x128xf32>
    %8 = arith.maximumf %6, %7 : vector<192x128xf32>
    %9 = arith.truncf %8 : vector<192x128xf32> to vector<192x128xbf16>
    %c0_6 = arith.constant 0 : index
    %c0_7 = arith.constant 0 : index
    %10 = vector.load %arg4[%c0_6, %c0_7] : memref<128x256xbf16, #tpu.memory_space<vmem>>, vector<128x256xbf16>
    %cst_8 = arith.constant dense<0.000000e+00> : vector<192x256xf32>
    %11 = tpu.matmul %9, %10, %cst_8 {dimension_numbers = #tpu.dot_dimension_numbers<[1], [0], [0], [1], [0, 0, 1, 1], [], []>} : vector<192x128xbf16>, vector<128x256xbf16>, vector<192x256xf32> -> vector<192x256xf32>
    %c0_9 = arith.constant 0 : index
    %c0_10 = arith.constant 0 : index
    %12 = vector.load %arg5[%c0_9, %c0_10] : memref<1x256xf32, #tpu.memory_space<vmem>>, vector<1x256xf32>
    %13 = vector.broadcast %12 : vector<1x256xf32> to vector<192x256xf32>
    %14 = arith.addf %11, %13 : vector<192x256xf32>
    %c0_11 = arith.constant 0 : index
    %c0_12 = arith.constant 0 : index
    %15 = vector.load %arg6[%c0_11, %c0_12] : memref<192x256xf32, #tpu.memory_space<vmem>>, vector<192x256xf32>
    tpu.vector_store %arg6[%c0_11, %c0_12], %14 {strides = array<i32>} : memref<192x256xf32, #tpu.memory_space<vmem>>, vector<192x256xf32>,
    return
  }
  func.func @transform_0(%arg0: i32) -> (i32, i32) {
    %c0_i32 = arith.constant 0 : i32
    %c0_i32_0 = arith.constant 0 : i32
    return %arg0, %c0_i32 : i32, i32
  }
  func.func @transform_1(%arg0: i32) -> (i32, i32) {
    %c0_i32 = arith.constant 0 : i32
    %c0_i32_0 = arith.constant 0 : i32
    %c0_i32_1 = arith.constant 0 : i32
    return %c0_i32, %c0_i32_0 : i32, i32
  }
  func.func @transform_2(%arg0: i32) -> (i32, i32) {
    %c0_i32 = arith.constant 0 : i32
    %c0_i32_0 = arith.constant 0 : i32
    %c0_i32_1 = arith.constant 0 : i32
    return %c0_i32, %c0_i32_0 : i32, i32
  }
  func.func @transform_3(%arg0: i32) -> (i32, i32) {
    %c0_i32 = arith.constant 0 : i32
    %c0_i32_0 = arith.constant 0 : i32
    %c0_i32_1 = arith.constant 0 : i32
    return %c0_i32, %c0_i32_0 : i32, i32
  }
  func.func @transform_4(%arg0: i32) -> (i32, i32) {
    %c0_i32 = arith.constant 0 : i32
    %c0_i32_0 = arith.constant 0 : i32
    %c0_i32_1 = arith.constant 0 : i32
    return %c0_i32, %c0_i32_0 : i32, i32
  }
  func.func @transform_5(%arg0: i32) -> (i32, i32) {
    %c0_i32 = arith.constant 0 : i32
    %c0_i32_0 = arith.constant 0 : i32
    return %arg0, %c0_i32 : i32, i32
  }
}

</mosaic_0001>

<bundles_post_ra>
// kernel: dictionary_expert.1
= control target key start
LH: loop header
LB: loop body
LE: loop exit
PB: predicated region body
PF: predicated region fallthrough
CT: control target
= control target key end

     0   :  { %s1033_s18 = smov 0   ;;  %s1292_s0 = inlined_call_operand.vmem [shape: f32[384,32], index: 0, kind: input, shape index: {}]   ;;  %s1293_s1 = inlined_call_operand.vmem [shape: bf16[32,128], index: 1, kind: input, shape index: {}]   ;;  %s1294_s2 = inlined_call_operand.vmem [shape: f32[1,128], index: 2, kind: input, shape index: {}]   ;;  %s1295_s3 = inlined_call_operand.vmem [shape: bf16[128,256], index: 3, kind: input, shape index: {}]   ;;  %s1296_s4 = inlined_call_operand.vmem [shape: f32[1,256], index: 4, kind: input, shape index: {}]   ;;  %s1297_s5 = inlined_call_operand.vmem [shape: f32[384,256], index: 5, kind: output, shape index: {}]  }
   0x1 LB: > { %s859_s19 = sadd.s32 4294967295, %s1000_s18   ;;  %p863_p0 = scmp.ge.s32.totalorder %s1000_s18, 1  ;;  %s1000_s18 = sphi %s1033_s18, %s15_s18  }
   0x2   : > { %p188_p1 = scmp.lt.s32.totalorder %s1000_s18, 3 }
   0x4   : > { %p189_p2 = pnand %p863_p0, %p188_p1 }
   0x5   : > { %v968_v0 = vld [vmem:[%s1293_s1] sm:$0xff] (!%p189_p2)   ;;  %s217_s22 = smul.u32 (!%p189_p2), 24, %s859_s19  ;;  %v969_v1 = vld [vmem:[%s1293_s1 + $0x8] sm:$0xff] (!%p189_p2)   ;;  %v975_v4 = vld [vmem:[%s1295_s3 + $0x14] ss:$8 sps:$4 sm:$0xff] (!%p189_p2)   ;;  %vm290_vm0 = vcmask (!%p189_p2), 261120  }
   0x6   : > { %192 = sbr.rel (%p189_p2) target bundleno = 531 (0x213), region = 40  ;;  %915 = vmatprep.subr.bf16.mxu0 (!%p189_p2), %v968_v0  ;;  %v972_v2 = vld [vmem:[%s1295_s3 + $0x4] ss:$8 sps:$4 sm:$0xff] (!%p189_p2)   ;;  %v970_v3 = vld [vmem:[%s1295_s3] ss:$8 sps:$4 sm:$0xff] (!%p189_p2)   ;;  %v1002_v54 = vmov (!%p189_p2), 0  }
   0x7   : > { %p218_p3 = scmp.lt.s32.totalorder (!%p189_p2), %s217_s22, 47  ;;  %916 = vmatpush3.bf16.msra.mxu0 (!%p189_p2), %v968_v0  ;;  %943 = vmatprep.subr.bf16.mxu1 (!%p189_p2), %v972_v2  ;;  %v973_v5 = vld [vmem:[%s1295_s3 + $0x10] ss:$8 sps:$4 sm:$0xff] (!%p189_p2)   ;;  %v978_v6 = vld [vmem:[%s1295_s3 + $0x24] ss:$8 sps:$4 sm:$0xff] (!%p189_p2)  }
   0x8   : > { %917 = vmatprep.subr.bf16.mxu0 (!%p189_p2), %v969_v1  ;;  %951 = vmatpush1.bf16.msra.mxu1 (!%p189_p2), %v970_v3  ;;  %v976_v16 = vld [vmem:[%s1295_s3 + $0x20] ss:$8 sps:$4 sm:$0xff] (!%p189_p2)   ;;  %v981_v19 = vld [vmem:[%s1295_s3 + $0x34] ss:$8 sps:$4 sm:$0xff] (!%p189_p2)   ;;  %v979_v23 = vld [vmem:[%s1295_s3 + $0x30] ss:$8 sps:$4 sm:$0xff] (!%p189_p2)  }
   0x9   : > { %944 = vmatprep.subr.bf16.mxu1 (!%p189_p2), %v975_v4  ;;  %v984_v25 = vld [vmem:[%s1295_s3 + $0x44] ss:$8 sps:$4 sm:$0xff] (!%p189_p2)   ;;  %v982_v26 = vld [vmem:[%s1295_s3 + $0x40] ss:$8 sps:$4 sm:$0xff] (!%p189_p2)   ;;  %v987_v29 = vld [vmem:[%s1295_s3 + $0x54] ss:$8 sps:$4 sm:$0xff] (!%p189_p2)   ;;  %672 = vmatprep.mubr.bf16.mxu1 (!%p189_p2), %v1002_v54 }
   0xa   : > { %v985_v33 = vld [vmem:[%s1295_s3 + $0x50] ss:$8 sps:$4 sm:$0xff] (!%p189_p2)   ;;  %v990_v50 = vld [vmem:[%s1295_s3 + $0x64] ss:$8 sps:$4 sm:$0xff] (!%p189_p2)   ;;  %v988_v51 = vld [vmem:[%s1295_s3 + $0x60] ss:$8 sps:$4 sm:$0xff] (!%p189_p2)  }
   0xb   : > { %918 = vmatpush3.bf16.msra.mxu0 (!%p189_p2), %v969_v1  ;;  %v993_v52 = vld [vmem:[%s1295_s3 + $0x74] ss:$8 sps:$4 sm:$0xff] (!%p189_p2)   ;;  %v991_v53 = vld [vmem:[%s1295_s3 + $0x70] ss:$8 sps:$4 sm:$0xff] (!%p189_p2)   ;;  %v1144_v55 = vld [vmem:[%s1294_s2] ss:$0 sm:$0xff] (!%p189_p2) }
   0xc   : > { %600 = vmatprep.subr.bf16.mxu0 (!%p189_p2), %v972_v2  ;;  %952 = vmatpush1.bf16.msra.mxu1 (!%p189_p2), %v973_v5 }
   0xd   : > { %s1299_s22 = smov (!%p218_p3, %s217_s22), 47  ;;  %945 = vmatprep.subr.bf16.mxu1 %v978_v6 }
   0xe   : > { %s864_s6 = sshll.u32 %s1299_s22, 3  ;;  %s900_s17 = sshll.u32 %s1299_s22, 4 }
   0xf   : > { %s1065_s11 = scalar_lea.vmem %s1292_s0, %s864_s6  ;;  %s1191_s21 = scalar_lea.vmem %s1297_s5, %s900_s17 }
  0x10   : > { %v231_v7 = vld [vmem:[%s1065_s11] sm:$0xff]  ;;  %v232_v8 = vld [vmem:[%s1065_s11 + $0x8] sm:$0xff]  ;;  %v233_v9 = vld [vmem:[%s1065_s11 + $0x10] sm:$0xff]  ;;  %953 = vmatpush1.bf16.msra.mxu1 %v976_v16 }
  0x11   : > { %v255_v10 = vpack.c.bf16 %v232_v8, %v231_v7  ;;  %v234_v11 = vld [vmem:[%s1065_s11 + $0x18] sm:$0xff]  ;;  %v235_v12 = vld [vmem:[%s1065_s11 + $0x20] sm:$0xff]  ;;  %v236_v13 = vld [vmem:[%s1065_s11 + $0x28] sm:$0xff]  ;;  %946 = vmatprep.subr.bf16.mxu1 %v981_v19 }
  0x12   : > { %v256_v14 = vpack.c.bf16 %v234_v11, %v233_v9  ;;  %v257_v15 = vpack.c.bf16 %v236_v13, %v235_v12  ;;  %v237_v17 = vld [vmem:[%s1065_s11 + $0x30] sm:$0xff]  ;;  %v238_v18 = vld [vmem:[%s1065_s11 + $0x38] sm:$0xff]  ;;  %v239_v20 = vld [vmem:[%s1065_s11 + $0x40] sm:$0xff] }
  0x13   : > { %919 = vmatprep.mubr.msk.bf16.mxu0 %vm290_vm0, %v255_v10  ;;  %v240_v21 = vld [vmem:[%s1065_s11 + $0x48] sm:$0xff]  ;;  %v258_v22 = vpack.c.bf16 %v238_v18, %v237_v17  ;;  %v241_v27 = vld [vmem:[%s1065_s11 + $0x50] sm:$0xff]  ;;  %v242_v28 = vld [vmem:[%s1065_s11 + $0x58] sm:$0xff] }
  0x14   : > { %920 = vmatmul.mubr.msk.bf16.vlgmr.msra.gmra.mrb[0].mxu0 %vm290_vm0, %v256_v14  ;;  %v259_v24 = vpack.c.bf16 %v240_v21, %v239_v20  ;;  %954 = vmatpush1.bf16.msra.mxu1 %v979_v23  ;;  %v243_v30 = vld [vmem:[%s1065_s11 + $0x60] sm:$0xff]  ;;  %v244_v31 = vld [vmem:[%s1065_s11 + $0x68] sm:$0xff]  ;;  %v260_v32 = vpack.c.bf16 %v242_v28, %v241_v27  ;;  %v245_v35 = vld [vmem:[%s1065_s11 + $0x70] sm:$0xff] }
  0x15   : > { %923 = vmatprep.mubr.msk.bf16.mxu0 %vm290_vm0, %v257_v15  ;;  %601 = vmatpush1.bf16.msra.mxu0 %v970_v3  ;;  %v261_v34 = vpack.c.bf16 %v244_v31, %v243_v30  ;;  %v246_v36 = vld [vmem:[%s1065_s11 + $0x78] sm:$0xff]  ;;  %v247_v37 = vld [vmem:[%s1065_s11 + $0x80] sm:$0xff]  ;;  %v248_v38 = vld [vmem:[%s1065_s11 + $0x88] sm:$0xff] }
  0x16   : > { %602 = vmatprep.subr.bf16.mxu0 %v975_v4  ;;  %947 = vmatprep.subr.bf16.mxu1 %v984_v25  ;;  %v262_v39 = vpack.c.bf16 %v246_v36, %v245_v35  ;;  %v263_v40 = vpack.c.bf16 %v248_v38, %v247_v37  ;;  %v249_v41 = vld [vmem:[%s1065_s11 + $0x90] sm:$0xff]  ;;  %v250_v42 = vld [vmem:[%s1065_s11 + $0x98] sm:$0xff]  ;;  %v251_v43 = vld [vmem:[%s1065_s11 + $0xa0] sm:$0xff] }
  0x17   : > { %v252_v44 = vld [vmem:[%s1065_s11 + $0xa8] sm:$0xff]  ;;  %v264_v45 = vpack.c.bf16 %v250_v42, %v249_v41  ;;  %v253_v47 = vld [vmem:[%s1065_s11 + $0xb0] sm:$0xff]  ;;  %v254_v48 = vld [vmem:[%s1065_s11 + $0xb8] sm:$0xff] }
  0x18   : > { %955 = vmatpush1.bf16.msra.mxu1 %v982_v26  ;;  %v265_v46 = vpack.c.bf16 %v252_v44, %v251_v43  ;;  %v266_v49 = vpack.c.bf16 %v254_v48, %v253_v47 }
  0x19   : > { %603 = vmatpush1.bf16.msra.mxu0 %v973_v5  ;;  %948 = vmatprep.subr.bf16.mxu1 %v987_v29 }
  0x1a   : > { %604 = vmatprep.subr.bf16.mxu0 %v978_v6 }
  0x1c   : > { %924 = vmatmul.mubr.msk.bf16.gmra.mrb[4].mxu0 %vm290_vm0, %v258_v22  ;;  %956 = vmatpush1.bf16.msra.mxu1 %v985_v33 }
  0x1d   : > { %927 = vmatprep.mubr.msk.bf16.mxu0 %vm290_vm0, %v259_v24  ;;  %605 = vmatpush1.bf16.msra.mxu0 %v976_v16 }
  0x1e   : > { %606 = vmatprep.subr.bf16.mxu0 %v981_v19  ;;  %949 = vmatprep.subr.bf16.mxu1 %v990_v50 }
  0x20   : > { %957 = vmatpush1.bf16.msra.mxu1 %v988_v51 }
  0x21   : > { %607 = vmatpush1.bf16.msra.mxu0 %v979_v23  ;;  %950 = vmatprep.subr.bf16.mxu1 %v993_v52 }
  0x22   : > { %608 = vmatprep.subr.bf16.mxu0 %v984_v25 }
  0x24   : > { %928 = vmatmul.mubr.msk.bf16.gmra.mrb[8].mxu0 %vm290_vm0, %v260_v32  ;;  %958 = vmatpush1.bf16.msra.mxu1 %v991_v53 }
  0x25   : > { %931 = vmatprep.mubr.msk.bf16.mxu0 %vm290_vm0, %v261_v34  ;;  %609 = vmatpush1.bf16.msra.mxu0 %v982_v26 }
  0x26   : > { %610 = vmatprep.subr.bf16.mxu0 %v987_v29 }
  0x29   : > { %611 = vmatpush1.bf16.msra.mxu0 %v985_v33 }
  0x2a   : > { %612 = vmatprep.subr.bf16.mxu0 %v990_v50 }
  0x2c   : > { %932 = vmatmul.mubr.msk.bf16.gmra.mrb[12].mxu0 %vm290_vm0, %v262_v39 }
  0x2d   : > { %935 = vmatprep.mubr.msk.bf16.mxu0 %vm290_vm0, %v263_v40  ;;  %613 = vmatpush1.bf16.msra.mxu0 %v988_v51 }
  0x2e   : > { %614 = vmatprep.subr.bf16.mxu0 %v993_v52 }
  0x31   : > { %615 = vmatpush1.bf16.msra.mxu0 %v991_v53 }
  0x34   : > { %936 = vmatmul.mubr.msk.bf16.gmra.mrb[16].mxu0 %vm290_vm0, %v264_v45 }
  0x35   : > { %939 = vmatprep.mubr.msk.bf16.mxu0 %vm290_vm0, %v265_v46 }
  0x3c   : > { %940 = vmatmul.mubr.msk.bf16.gmra.mrb[20].mxu0 %vm290_vm0, %v266_v49 }
  0x3d   : > { %632 = vmatprep.mubr.bf16.mxu0 %v1002_v54 }
  0xe7   : > { %v921_v56 = vpop.f32.mrb[0].mxu0 }
  0xe8   : > { %v370_v57 = vadd.f32 %v921_v56, %v1144_v55  ;;  %v361_v58 = vpop.f32.mrb[1].mxu0 }
  0xe9   : > { %v362_v59 = vadd.f32 %v1144_v55, %v361_v58  ;;  %v922_v60 = vpop.f32.mrb[2].mxu0 }
  0xea   : > { %v373_v61 = vadd.f32 %v922_v60, %v1144_v55  ;;  %v364_v62 = vpop.f32.mrb[3].mxu0  ;;  %v458_v0 = vmax.f32 %v370_v57, 0.0 }
  0xeb   : > { %v365_v63 = vadd.f32 %v1144_v55, %v364_v62  ;;  %v456_v2 = vmax.f32 %v362_v59, 0.0 }
  0xec   : > { %v459_v1 = vmax.f32 %v373_v61, 0.0 }
  0xed   : > { %v457_v3 = vmax.f32 %v365_v63, 0.0 }
  0xee   : > { %v481_v4 = vpack.c.bf16 %v459_v1, %v458_v0 }
  0xef   : > { %v480_v5 = vpack.c.bf16 %v457_v3, %v456_v2  ;;  %v925_v6 = vpop.f32.mrb[4].mxu0 }
  0xf0   : > { %v386_v7 = vadd.f32 %v925_v6, %v1144_v55  ;;  %v377_v8 = vpop.f32.mrb[5].mxu0 }
  0xf1   : > { %v378_v9 = vadd.f32 %v1144_v55, %v377_v8  ;;  %v926_v10 = vpop.f32.mrb[6].mxu0  ;;  %633 = vmatmul.mubr.bf16.vlgmr.msra.gmra.mrb[24].mxu0 %v480_v5 }
  0xf2   : > { %v389_v11 = vadd.f32 %v926_v10, %v1144_v55  ;;  %v380_v12 = vpop.f32.mrb[7].mxu0  ;;  %642 = vmatprep.mubr.bf16.mxu0 %v1002_v54  ;;  %v462_v14 = vmax.f32 %v386_v7, 0.0 }
  0xf3   : > { %v381_v13 = vadd.f32 %v1144_v55, %v380_v12  ;;  %v460_v16 = vmax.f32 %v378_v9, 0.0 }
  0xf4   : > { %v463_v15 = vmax.f32 %v389_v11, 0.0 }
  0xf5   : > { %v461_v17 = vmax.f32 %v381_v13, 0.0 }
  0xf6   : > { %v483_v18 = vpack.c.bf16 %v463_v15, %v462_v14  ;;  %v510_v14 = vlaneseq }
  0xf7   : > { %v482_v19 = vpack.c.bf16 %v461_v17, %v460_v16  ;;  %v929_v20 = vpop.f32.mrb[8].mxu0  ;;  %v508_v16 = vld [vmem:[%s1296_s4] sm:$0x3] }
  0xf8   : > { %v402_v21 = vadd.f32 %v929_v20, %v1144_v55  ;;  %v393_v22 = vpop.f32.mrb[9].mxu0 }
  0xf9   : > { %v394_v23 = vadd.f32 %v1144_v55, %v393_v22  ;;  %v930_v24 = vpop.f32.mrb[10].mxu0  ;;  %643 = vmatmul.mubr.bf16.gmra.mrb[28].mxu0 %v481_v4 }
  0xfa   : > { %v405_v25 = vadd.f32 %v930_v24, %v1144_v55  ;;  %v396_v26 = vpop.f32.mrb[11].mxu0  ;;  %652 = vmatprep.mubr.bf16.mxu0 %v1002_v54  ;;  %v466_v28 = vmax.f32 %v402_v21, 0.0 }
  0xfb   : > { %v397_v27 = vadd.f32 %v1144_v55, %v396_v26  ;;  %v464_v30 = vmax.f32 %v394_v23, 0.0 }
  0xfc   : > { %v467_v29 = vmax.f32 %v405_v25, 0.0 }
  0xfd   : > { %v465_v31 = vmax.f32 %v397_v27, 0.0 }
  0xfe   : > { %v485_v32 = vpack.c.bf16 %v467_v29, %v466_v28 }
  0xff   : > { %v484_v33 = vpack.c.bf16 %v465_v31, %v464_v30  ;;  %v933_v34 = vpop.f32.mrb[12].mxu0 }
 0x100   : > { %v418_v35 = vadd.f32 %v933_v34, %v1144_v55  ;;  %v409_v36 = vpop.f32.mrb[13].mxu0 }
 0x101   : > { %653 = vmatmul.mubr.bf16.gmra.mrb[32].mxu0 %v482_v19  ;;  %673 = vmatmul.mubr.bf16.vlgmr.msra.gmra.mrb[0].mxu1 %v484_v33  ;;  %v410_v37 = vadd.f32 %v1144_v55, %v409_v36  ;;  %v934_v38 = vpop.f32.mrb[14].mxu0 }
 0x102   : > { %v470_v39 = vmax.f32 %v418_v35, 0.0  ;;  %v421_v40 = vadd.f32 %v934_v38, %v1144_v55  ;;  %v412_v41 = vpop.f32.mrb[15].mxu0  ;;  %662 = vmatprep.mubr.bf16.mxu0 %v1002_v54  ;;  %682 = vmatprep.mubr.bf16.mxu1 %v1002_v54 }
 0x103   : > { %v468_v42 = vmax.f32 %v410_v37, 0.0  ;;  %v413_v43 = vadd.f32 %v1144_v55, %v412_v41 }
 0x104   : > { %v471_v44 = vmax.f32 %v421_v40, 0.0 }
 0x105   : > { %v469_v45 = vmax.f32 %v413_v43, 0.0 }
 0x106   : > { %v487_v46 = vpack.c.bf16 %v471_v44, %v470_v39 }
 0x107   : > { %v486_v47 = vpack.c.bf16 %v469_v45, %v468_v42  ;;  %v937_v48 = vpop.f32.mrb[16].mxu0 }
 0x108   : > { %v434_v49 = vadd.f32 %v937_v48, %v1144_v55  ;;  %v425_v50 = vpop.f32.mrb[17].mxu0 }
 0x109   : > { %663 = vmatmul.mubr.bf16.gmra.mrb[36].mxu0 %v483_v18  ;;  %683 = vmatmul.mubr.bf16.gmra.mrb[4].mxu1 %v485_v32  ;;  %v426_v51 = vadd.f32 %v1144_v55, %v425_v50  ;;  %v938_v52 = vpop.f32.mrb[18].mxu0 }
 0x10a   : > { %692 = vmatprep.mubr.bf16.mxu1 %v1002_v54  ;;  %v474_v53 = vmax.f32 %v434_v49, 0.0  ;;  %v437_v56 = vadd.f32 %v938_v52, %v1144_v55  ;;  %v428_v57 = vpop.f32.mrb[19].mxu0 }
 0x10b   : > { %v472_v58 = vmax.f32 %v426_v51, 0.0  ;;  %v429_v59 = vadd.f32 %v1144_v55, %v428_v57 }
 0x10c   : > { %v475_v60 = vmax.f32 %v437_v56, 0.0 }
 0x10d   : > { %v473_v61 = vmax.f32 %v429_v59, 0.0 }
 0x10e   : > { %v489_v62 = vpack.c.bf16 %v475_v60, %v474_v53 }
 0x10f   : > { %v488_v63 = vpack.c.bf16 %v473_v61, %v472_v58  ;;  %v941_v0 = vpop.f32.mrb[20].mxu0 }
 0x110   : > { %v450_v1 = vadd.f32 %v941_v0, %v1144_v55  ;;  %v441_v2 = vpop.f32.mrb[21].mxu0 }
 0x111   : > { %693 = vmatmul.mubr.bf16.gmra.mrb[8].mxu1 %v486_v47  ;;  %v442_v3 = vadd.f32 %v1144_v55, %v441_v2  ;;  %v942_v4 = vpop.f32.mrb[22].mxu0 }
 0x112   : > { %702 = vmatprep.mubr.bf16.mxu1 %v1002_v54  ;;  %v478_v5 = vmax.f32 %v450_v1, 0.0  ;;  %v453_v6 = vadd.f32 %v942_v4, %v1144_v55  ;;  %v444_v7 = vpop.f32.mrb[23].mxu0 }
 0x113   : > { %v476_v8 = vmax.f32 %v442_v3, 0.0  ;;  %v445_v9 = vadd.f32 %v1144_v55, %v444_v7  ;;  %v511_v55 = vshrl.u32 %v510_v14, 7 }
 0x114   : > { %v479_v10 = vmax.f32 %v453_v6, 0.0 }
 0x115   : > { %v477_v11 = vmax.f32 %v445_v9, 0.0  ;;  %v512_v15 = vsub.s32 0, %v511_v55  ;;  %v516_v17 = vsub.s32 1, %v511_v55 }
 0x116   : > { %v491_v12 = vpack.c.bf16 %v479_v10, %v478_v5 }
 0x117   : > { %v490_v13 = vpack.c.bf16 %v477_v11, %v476_v8  ;;  %v1184_v18 = vrot.slane %v508_v16, %v512_v15  ;;  %v1186_v19 = vrot.slane %v508_v16, %v516_v17 }
 0x119   : > { %703 = vmatmul.mubr.bf16.gmra.mrb[12].mxu1 %v487_v46 }
 0x11a   : > { %712 = vmatprep.mubr.bf16.mxu1 %v1002_v54 }
 0x121   : > { %713 = vmatmul.mubr.bf16.gmra.mrb[16].mxu1 %v488_v63 }
 0x122   : > { %722 = vmatprep.mubr.bf16.mxu1 %v1002_v54 }
 0x129   : > { %723 = vmatmul.mubr.bf16.gmra.mrb[20].mxu1 %v489_v62 }
 0x12a   : > { %732 = vmatprep.mubr.bf16.mxu1 %v1002_v54 }
 0x131   : > { %733 = vmatmul.mubr.bf16.gmra.mrb[24].mxu1 %v490_v13 }
 0x132   : > { %742 = vmatprep.mubr.bf16.mxu1 %v1002_v54 }
 0x139   : > { %743 = vmatmul.mubr.bf16.gmra.mrb[28].mxu1 %v491_v12 }
 0x1c4   : > { %v634_v54 = vpop.f32.mrb[24].mxu0 }
 0x1c5   : > { %v635_v20 = vadd.f32 %v634_v54, %v1184_v18  ;;  %v636_v21 = vpop.f32.mrb[25].mxu0 }
 0x1c6   : > { %v637_v22 = vadd.f32 %v636_v21, %v1186_v19  ;;  %v638_v23 = vpop.f32.mrb[26].mxu0 }
 0x1c7   : > { %753 = vst [vmem:[%s1191_s21] sm:$0xff] %v635_v20  ;;  %v639_v24 = vadd.f32 %v638_v23, %v1184_v18  ;;  %v640_v25 = vpop.f32.mrb[27].mxu0 }
 0x1c8   : > { %754 = vst [vmem:[%s1191_s21 + $0x8] sm:$0xff] %v637_v22  ;;  %v641_v26 = vadd.f32 %v640_v25, %v1186_v19 }
 0x1c9   : > { %755 = vst [vmem:[%s1191_s21 + $0x10] sm:$0xff] %v639_v24 }
 0x1ca   : > { %756 = vst [vmem:[%s1191_s21 + $0x18] sm:$0xff] %v641_v26 }
 0x1cc   : > { %v644_v27 = vpop.f32.mrb[28].mxu0 }
 0x1cd   : > { %v645_v28 = vadd.f32 %v644_v27, %v1184_v18  ;;  %v646_v29 = vpop.f32.mrb[29].mxu0 }
 0x1ce   : > { %v647_v30 = vadd.f32 %v646_v29, %v1186_v19  ;;  %v648_v31 = vpop.f32.mrb[30].mxu0 }
 0x1cf   : > { %757 = vst [vmem:[%s1191_s21 + $0x20] sm:$0xff] %v645_v28  ;;  %v649_v32 = vadd.f32 %v648_v31, %v1184_v18  ;;  %v650_v33 = vpop.f32.mrb[31].mxu0 }
 0x1d0   : > { %758 = vst [vmem:[%s1191_s21 + $0x28] sm:$0xff] %v647_v30  ;;  %v651_v34 = vadd.f32 %v650_v33, %v1186_v19 }
 0x1d1   : > { %759 = vst [vmem:[%s1191_s21 + $0x30] sm:$0xff] %v649_v32 }
 0x1d2   : > { %760 = vst [vmem:[%s1191_s21 + $0x38] sm:$0xff] %v651_v34 }
 0x1d4   : > { %v654_v35 = vpop.f32.mrb[32].mxu0  ;;  %v674_v36 = vpop.f32.mrb[0].mxu1 }
 0x1d5   : > { %v655_v37 = vadd.f32 %v654_v35, %v1184_v18  ;;  %v675_v38 = vadd.f32 %v674_v36, %v1184_v18  ;;  %v656_v39 = vpop.f32.mrb[33].mxu0  ;;  %v676_v40 = vpop.f32.mrb[1].mxu1 }
 0x1d6   : > { %v657_v41 = vadd.f32 %v656_v39, %v1186_v19  ;;  %v677_v42 = vadd.f32 %v676_v40, %v1186_v19  ;;  %v658_v43 = vpop.f32.mrb[34].mxu0  ;;  %v678_v44 = vpop.f32.mrb[2].mxu1 }
 0x1d7   : > { %761 = vst [vmem:[%s1191_s21 + $0x40] sm:$0xff] %v655_v37  ;;  %769 = vst [vmem:[%s1191_s21 + $0x80] sm:$0xff] %v675_v38  ;;  %v659_v45 = vadd.f32 %v658_v43, %v1184_v18  ;;  %v679_v46 = vadd.f32 %v678_v44, %v1184_v18  ;;  %v660_v47 = vpop.f32.mrb[35].mxu0  ;;  %v680_v48 = vpop.f32.mrb[3].mxu1 }
 0x1d8   : > { %762 = vst [vmem:[%s1191_s21 + $0x48] sm:$0xff] %v657_v41  ;;  %770 = vst [vmem:[%s1191_s21 + $0x88] sm:$0xff] %v677_v42  ;;  %v661_v49 = vadd.f32 %v660_v47, %v1186_v19  ;;  %v681_v50 = vadd.f32 %v680_v48, %v1186_v19 }
 0x1d9   : > { %763 = vst [vmem:[%s1191_s21 + $0x50] sm:$0xff] %v659_v45  ;;  %771 = vst [vmem:[%s1191_s21 + $0x90] sm:$0xff] %v679_v46 }
 0x1da   : > { %764 = vst [vmem:[%s1191_s21 + $0x58] sm:$0xff] %v661_v49  ;;  %772 = vst [vmem:[%s1191_s21 + $0x98] sm:$0xff] %v681_v50 }
 0x1dc   : > { %v664_v51 = vpop.f32.mrb[36].mxu0  ;;  %v684_v52 = vpop.f32.mrb[4].mxu1 }
 0x1dd   : > { %v665_v53 = vadd.f32 %v664_v51, %v1184_v18  ;;  %v685_v56 = vadd.f32 %v684_v52, %v1184_v18  ;;  %v666_v57 = vpop.f32.mrb[37].mxu0  ;;  %v686_v58 = vpop.f32.mrb[5].mxu1 }
 0x1de   : > { %v667_v59 = vadd.f32 %v666_v57, %v1186_v19  ;;  %v687_v60 = vadd.f32 %v686_v58, %v1186_v19  ;;  %v668_v61 = vpop.f32.mrb[38].mxu0  ;;  %v688_v62 = vpop.f32.mrb[6].mxu1 }
 0x1df   : > { %765 = vst [vmem:[%s1191_s21 + $0x60] sm:$0xff] %v665_v53  ;;  %773 = vst [vmem:[%s1191_s21 + $0xa0] sm:$0xff] %v685_v56  ;;  %v669_v63 = vadd.f32 %v668_v61, %v1184_v18  ;;  %v689_v0 = vadd.f32 %v688_v62, %v1184_v18  ;;  %v670_v1 = vpop.f32.mrb[39].mxu0  ;;  %v690_v2 = vpop.f32.mrb[7].mxu1 }
 0x1e0   : > { %766 = vst [vmem:[%s1191_s21 + $0x68] sm:$0xff] %v667_v59  ;;  %774 = vst [vmem:[%s1191_s21 + $0xa8] sm:$0xff] %v687_v60  ;;  %v671_v3 = vadd.f32 %v670_v1, %v1186_v19  ;;  %v691_v4 = vadd.f32 %v690_v2, %v1186_v19 }
 0x1e1   : > { %767 = vst [vmem:[%s1191_s21 + $0x70] sm:$0xff] %v669_v63  ;;  %775 = vst [vmem:[%s1191_s21 + $0xb0] sm:$0xff] %v689_v0 }
 0x1e2   : > { %768 = vst [vmem:[%s1191_s21 + $0x78] sm:$0xff] %v671_v3  ;;  %776 = vst [vmem:[%s1191_s21 + $0xb8] sm:$0xff] %v691_v4 }
 0x1e4   : > { %v694_v5 = vpop.f32.mrb[8].mxu1 }
 0x1e5   : > { %v695_v6 = vadd.f32 %v694_v5, %v1184_v18  ;;  %v696_v7 = vpop.f32.mrb[9].mxu1 }
 0x1e6   : > { %v697_v8 = vadd.f32 %v696_v7, %v1186_v19  ;;  %v698_v9 = vpop.f32.mrb[10].mxu1 }
 0x1e7   : > { %777 = vst [vmem:[%s1191_s21 + $0xc0] sm:$0xff] %v695_v6  ;;  %v699_v10 = vadd.f32 %v698_v9, %v1184_v18  ;;  %v700_v11 = vpop.f32.mrb[11].mxu1 }
 0x1e8   : > { %778 = vst [vmem:[%s1191_s21 + $0xc8] sm:$0xff] %v697_v8  ;;  %v701_v12 = vadd.f32 %v700_v11, %v1186_v19 }
 0x1e9   : > { %779 = vst [vmem:[%s1191_s21 + $0xd0] sm:$0xff] %v699_v10 }
 0x1ea   : > { %780 = vst [vmem:[%s1191_s21 + $0xd8] sm:$0xff] %v701_v12 }
 0x1ec   : > { %v704_v13 = vpop.f32.mrb[12].mxu1 }
 0x1ed   : > { %v705_v14 = vadd.f32 %v704_v13, %v1184_v18  ;;  %v706_v55 = vpop.f32.mrb[13].mxu1 }
 0x1ee   : > { %v707_v15 = vadd.f32 %v706_v55, %v1186_v19  ;;  %v708_v16 = vpop.f32.mrb[14].mxu1 }
 0x1ef   : > { %781 = vst [vmem:[%s1191_s21 + $0xe0] sm:$0xff] %v705_v14  ;;  %v709_v17 = vadd.f32 %v708_v16, %v1184_v18  ;;  %v710_v54 = vpop.f32.mrb[15].mxu1 }
 0x1f0   : > { %782 = vst [vmem:[%s1191_s21 + $0xe8] sm:$0xff] %v707_v15  ;;  %v711_v20 = vadd.f32 %v710_v54, %v1186_v19 }
 0x1f1   : > { %783 = vst [vmem:[%s1191_s21 + $0xf0] sm:$0xff] %v709_v17 }
 0x1f2   : > { %784 = vst [vmem:[%s1191_s21 + $0xf8] sm:$0xff] %v711_v20 }
 0x1f4   : > { %v714_v21 = vpop.f32.mrb[16].mxu1 }
 0x1f5   : > { %v715_v22 = vadd.f32 %v714_v21, %v1184_v18  ;;  %v716_v23 = vpop.f32.mrb[17].mxu1 }
 0x1f6   : > { %v717_v24 = vadd.f32 %v716_v23, %v1186_v19  ;;  %v718_v25 = vpop.f32.mrb[18].mxu1 }
 0x1f7   : > { %785 = vst [vmem:[%s1191_s21 + $0x100] sm:$0xff] %v715_v22  ;;  %v719_v26 = vadd.f32 %v718_v25, %v1184_v18  ;;  %v720_v27 = vpop.f32.mrb[19].mxu1 }
 0x1f8   : > { %786 = vst [vmem:[%s1191_s21 + $0x108] sm:$0xff] %v717_v24  ;;  %v721_v28 = vadd.f32 %v720_v27, %v1186_v19 }
 0x1f9   : > { %787 = vst [vmem:[%s1191_s21 + $0x110] sm:$0xff] %v719_v26 }
 0x1fa   : > { %788 = vst [vmem:[%s1191_s21 + $0x118] sm:$0xff] %v721_v28 }
 0x1fc   : > { %v724_v29 = vpop.f32.mrb[20].mxu1 }
 0x1fd   : > { %v725_v30 = vadd.f32 %v724_v29, %v1184_v18  ;;  %v726_v31 = vpop.f32.mrb[21].mxu1 }
 0x1fe   : > { %v727_v32 = vadd.f32 %v726_v31, %v1186_v19  ;;  %v728_v33 = vpop.f32.mrb[22].mxu1 }
 0x1ff   : > { %789 = vst [vmem:[%s1191_s21 + $0x120] sm:$0xff] %v725_v30  ;;  %v729_v34 = vadd.f32 %v728_v33, %v1184_v18  ;;  %v730_v35 = vpop.f32.mrb[23].mxu1 }
 0x200   : > { %790 = vst [vmem:[%s1191_s21 + $0x128] sm:$0xff] %v727_v32  ;;  %v731_v36 = vadd.f32 %v730_v35, %v1186_v19 }
 0x201   : > { %791 = vst [vmem:[%s1191_s21 + $0x130] sm:$0xff] %v729_v34 }
 0x202   : > { %792 = vst [vmem:[%s1191_s21 + $0x138] sm:$0xff] %v731_v36 }
 0x204   : > { %v734_v37 = vpop.f32.mrb[24].mxu1 }
 0x205   : > { %v735_v38 = vadd.f32 %v734_v37, %v1184_v18  ;;  %v736_v39 = vpop.f32.mrb[25].mxu1 }
 0x206   : > { %v737_v40 = vadd.f32 %v736_v39, %v1186_v19  ;;  %v738_v41 = vpop.f32.mrb[26].mxu1 }
 0x207   : > { %793 = vst [vmem:[%s1191_s21 + $0x140] sm:$0xff] %v735_v38  ;;  %v739_v42 = vadd.f32 %v738_v41, %v1184_v18  ;;  %v740_v43 = vpop.f32.mrb[27].mxu1 }
 0x208   : > { %794 = vst [vmem:[%s1191_s21 + $0x148] sm:$0xff] %v737_v40  ;;  %v741_v44 = vadd.f32 %v740_v43, %v1186_v19 }
 0x209   : > { %795 = vst [vmem:[%s1191_s21 + $0x150] sm:$0xff] %v739_v42 }
 0x20a   : > { %796 = vst [vmem:[%s1191_s21 + $0x158] sm:$0xff] %v741_v44 }
 0x20c   : > { %v744_v45 = vpop.f32.mrb[28].mxu1 }
 0x20d   : > { %v745_v46 = vadd.f32 %v744_v45, %v1184_v18  ;;  %v746_v47 = vpop.f32.mrb[29].mxu1 }
 0x20e   : > { %v747_v48 = vadd.f32 %v746_v47, %v1186_v19  ;;  %v748_v49 = vpop.f32.mrb[30].mxu1 }
 0x20f   : > { %797 = vst [vmem:[%s1191_s21 + $0x160] sm:$0xff] %v745_v46  ;;  %v749_v50 = vadd.f32 %v748_v49, %v1184_v18  ;;  %v750_v51 = vpop.f32.mrb[31].mxu1 }
 0x210   : > { %798 = vst [vmem:[%s1191_s21 + $0x168] sm:$0xff] %v747_v48  ;;  %v751_v52 = vadd.f32 %v750_v51, %v1186_v19 }
 0x211   : > { %799 = vst [vmem:[%s1191_s21 + $0x170] sm:$0xff] %v749_v50 }
 0x212   : > { %800 = vst [vmem:[%s1191_s21 + $0x178] sm:$0xff] %v751_v52 }
 0x213 PF: > { %s15_s18 = sadd.s32 1, %s1000_s18  }
 0x214   : > { %p12_p4 = scmp.ge.s32.totalorder %s15_s18, 4  }
 0x216   :  { %14 = sbr.rel (!%p12_p4) target bundleno = 1 (0x1), region = 70 }

</bundles_post_ra>
